<compile_context>
chip_gen: v7x
topology: tpu7x:2x2x1
jax: 0.10.0
libtpu: 0.0.40
codegen_flags: <defaults>
</compile_context>

<pallas_src>
import jax
import jax.numpy as jnp
import numpy as np
from jax.experimental import pallas as pl
from jax.experimental.pallas import tpu as pltpu


def _identity_alias_kernel(x_ref, o_ref):
    # Output is the same buffer as the input (aliased): nothing to move.
    # touch() keeps a (fake) read/write dependency on the output ref so the
    # kernel body is not empty and ordering is preserved.
    del x_ref
    pltpu.touch(o_ref)


def _identity_copy_kernel(x_hbm, o_hbm, sem):
    # Single HBM->HBM DMA: purely DMA-engine / HBM-bandwidth bound.
    cp = pltpu.make_async_copy(x_hbm, o_hbm, sem)
    cp.start()
    cp.wait()


def identity(x: jax.Array) -> jax.Array:
    """Pallas identity: returns an array equal to x (same shape & dtype)."""
    out_shape = jax.ShapeDtypeStruct(x.shape, x.dtype)
    hbm = pl.BlockSpec(memory_space=pl.ANY)  # leave operands where they are (HBM)

    try:
        # Zero-copy path: output aliases the input buffer, kernel is a no-op.
        return pl.pallas_call(
            _identity_alias_kernel,
            out_shape=out_shape,
            in_specs=[hbm],
            out_specs=hbm,
            input_output_aliases={0: 0},
        )(x)
    except Exception:
        # Robust fallback: one direct HBM->HBM DMA (no VMEM round-trip, no grid).
        return pl.pallas_call(
            _identity_copy_kernel,
            out_shape=out_shape,
            in_specs=[hbm],
            out_specs=hbm,
            scratch_shapes=[pltpu.SemaphoreType.DMA(())],
        )(x)


if __name__ == "__main__":
    key = jax.random.PRNGKey(0)
    # Small NCHW input consistent with a CIFAR-style model: batch=2, C=4, H=W=16.
    x = jax.random.normal(key, (2, 4, 16, 16), dtype=jnp.float32)
    # Host-side reference copy taken before the call (robust to output aliasing).
    x_host = np.asarray(jax.device_get(x))

    y = identity(x)
    y = jax.block_until_ready(y)

    assert y.shape == x_host.shape, (y.shape, x_host.shape)
    assert y.dtype == x_host.dtype, (y.dtype, x_host.dtype)
    assert np.array_equal(np.asarray(jax.device_get(y)), x_host), "identity output mismatch"

    print("KERNEL_OK")
</pallas_src>

<mosaic_0001>
module attributes {stable_mosaic.version = 11 : i64} {
  func.func @_identity_alias_kernel(%arg0: memref<2x4x16x16xf32, #tpu.memory_space<any>>, %arg1: memref<2x4x16x16xf32, #tpu.memory_space<any>>) attributes {dimension_semantics = [], scalar_prefetch = 0 : i64, scratch_operands = 0 : i64, tpu.core_type = #tpu.core_type<tc>} {
    return
  }
}

module attributes {stable_mosaic.version = 11 : i64} {
  func.func @_identity_copy_kernel(%arg0: memref<2x4x16x16xf32, #tpu.memory_space<any>>, %arg1: memref<2x4x16x16xf32, #tpu.memory_space<any>>, %arg2: memref<!tpu.dma_semaphore, #tpu.memory_space<semaphore_mem>>) attributes {dimension_semantics = [], scalar_prefetch = 0 : i64, scratch_operands = 1 : i64, tpu.core_type = #tpu.core_type<tc>} {
    tpu.enqueue_dma source(%arg0 : memref<2x4x16x16xf32, #tpu.memory_space<any>>) target(%arg1 : memref<2x4x16x16xf32, #tpu.memory_space<any>>) target_semaphore(%arg2 : memref<!tpu.dma_semaphore, #tpu.memory_space<semaphore_mem>>)
    tpu.wait_dma2 semaphore(%arg2 : memref<!tpu.dma_semaphore, #tpu.memory_space<semaphore_mem>>) src(%arg0 : memref<2x4x16x16xf32, #tpu.memory_space<any>>) dst(%arg1 : memref<2x4x16x16xf32, #tpu.memory_space<any>>)
    return
  }
}

</mosaic_0001>

<bundles_post_ra>
// kernel: tpu_custom_call.1
= control target key start
LH: loop header
LB: loop body
LE: loop exit
PB: predicated region body
PF: predicated region fallthrough
CT: control target
= control target key end

     0   :  { %s16_s0 = inlined_call_operand.hbm [shape: f32[2,4,16,16], index: 0, kind: input, shape index: {}, may-alias: {0,1}]   ;;  %s17_s1 = inlined_call_operand.hbm [shape: f32[2,4,16,16], index: 1, kind: output, shape index: {}, may-alias: {0,1}]  }

// kernel: tpu_custom_call.1
= control target key start
LH: loop header
LB: loop body
LE: loop exit
PB: predicated region body
PF: predicated region fallthrough
CT: control target
= control target key end

     0   :  { %s36_s6 = smov [#allocation2]   ;;  %s37_s7 = smov [#allocation3]   ;;  %s55_s0 = inlined_call_operand.hbm [shape: f32[2,4,16,16], index: 0, kind: input, shape index: {}]   ;;  %s56_s1 = inlined_call_operand.hbm [shape: f32[2,4,16,16], index: 1, kind: output, shape index: {}]  }
   0x1   :  { %s38_s8 = smov 0  }
   0x2   :  { %18 = dma.general %s55_s0, 2048, %s56_s1, %s36_s6, %s37_s7, [#allocation4], %s38_s8, 0  }
   0x3   :  { %34 = dma.done.wait [#allocation2], 2048 }
   0x4   :  { %35 = vsyncadd [#allocation2], 4294965248 }
   0x5   :  { %24 = vsyncmov [#allocation2] }
   0x8   :  { %s25_s13 = vpop.sfrf %24 }
   0x9   :  { %p30_p0 = scmp.ne.s32.totalorder %s25_s13, 0 }
   0xb   :  { %29 = shalt.err (%p30_p0)  }

</bundles_post_ra>
